<compile_context>
chip_gen: v7x
topology: tpu7x:2x2x1
jax: 0.10.0
libtpu: 0.0.40
codegen_flags: <defaults>
</compile_context>

<pallas_src>
import jax
import jax.numpy as jnp
from jax.experimental import pallas as pl
from jax.experimental.pallas import tpu as pltpu

LANE = 128       # TPU lane width
SUBLANE = 8      # sublane granularity for the (8,128) block constraint
S_MAX = 2048     # max sublane rows per tile: ~3 KiB/row double-buffered -> ~6 MiB VMEM


def mlp_kernel(params_ref, x_ref, o_ref):
    """params_ref: SMEM f32[17] = [w1 (4x2 row-major) | b1 (4) | 0.5*w2 (4) | 0.5*b2]
       x_ref:  VMEM f32[2, S, 128]  (feature, sublane-rows, lanes); batch = S*128
       o_ref:  VMEM f32[S, 128]     sublane+lane dense output slab
    """
    x0 = x_ref[0]          # (S, 128)  feature 0
    x1 = x_ref[1]          # (S, 128)  feature 1

    # acc accumulates 0.5 * (fc2(relu(fc1(x)))); w2/b2 are pre-halved in SMEM so
    # sigmoid(z) = 0.5 * tanh(z/2) + 0.5 costs one EUP op + 1 mul + 1 add.
    acc = jnp.zeros_like(x0) + params_ref[16]          # 0.5 * b2
    for j in range(4):
        w1_j0 = params_ref[2 * j + 0]                  # w1[j, 0]
        w1_j1 = params_ref[2 * j + 1]                  # w1[j, 1]
        b1_j = params_ref[8 + j]                       # b1[j]
        w2h_j = params_ref[12 + j]                     # 0.5 * w2[0, j]
        h_j = jnp.maximum(w1_j0 * x0 + w1_j1 * x1 + b1_j, 0.0)
        acc = acc + w2h_j * h_j

    o_ref[...] = 0.5 * jnp.tanh(acc) + 0.5             # exact sigmoid via EUP tanh


def mlp_forward(x, w1, b1, w2, b2):
    """x: (B, 2) f32; w1: (4, 2); b1: (4,); w2: (1, 4); b2: (1,). Returns (B, 1) f32."""
    B = x.shape[0]
    R = pl.cdiv(B, LANE)                       # sublane rows needed for the batch

    if R <= SUBLANE:
        S = R                                  # single tile == full array (any R allowed)
    else:
        # >= 2 grid steps so v7x's two TensorCores both get work; cap VMEM footprint.
        S = min(S_MAX, pl.cdiv(R, 2))
        S = pl.cdiv(S, SUBLANE) * SUBLANE      # block sublane dim must be a multiple of 8
    R_pad = pl.cdiv(R, S) * S
    B_pad = R_pad * LANE
    grid = (R_pad // S,)

    # Pack all 17 parameters into one flat scalar-prefetched (SMEM) vector.
    # fc2 weights/bias are pre-halved for the tanh-based exact sigmoid.
    params = jnp.concatenate([
        w1.reshape(-1), b1.reshape(-1),
        0.5 * w2.reshape(-1), 0.5 * b2.reshape(-1),
    ]).astype(jnp.float32)

    # Sublane+lane dense relayout: (B, 2) -> (2, R_pad, 128), zero-padded tail.
    # TODO(synk): one extra HBM pass; have the producer emit this layout (or enable
    # input fusion) in a real pipeline so the kernel reads x only once.
    x_t = jnp.zeros((2, B_pad), jnp.float32).at[:, :B].set(x.T.astype(jnp.float32))
    x_t = x_t.reshape(2, R_pad, LANE)

    out = pl.pallas_call(
        mlp_kernel,
        out_shape=jax.ShapeDtypeStruct((R_pad, LANE), jnp.float32),
        grid_spec=pltpu.PrefetchScalarGridSpec(
            num_scalar_prefetch=1,                                  # params -> SMEM
            grid=grid,
            in_specs=[pl.BlockSpec((2, S, LANE), lambda i, p: (0, i, 0))],
            out_specs=pl.BlockSpec((S, LANE), lambda i, p: (i, 0)),
        ),
        compiler_params=pltpu.CompilerParams(
            dimension_semantics=("parallel",),   # megacore sharding on v7x; no-op v5e/v6e
        ),
    )(params, x_t)

    return out.reshape(B_pad)[:B].reshape(B, 1)


def mlp_reference(x, w1, b1, w2, b2):
    h = jnp.maximum(x @ w1.T + b1, 0.0)
    return jax.nn.sigmoid(h @ w2.T + b2)


if __name__ == "__main__":
    key = jax.random.PRNGKey(0)
    k_w1, k_b1, k_w2, k_b2, k1, k2, k3 = jax.random.split(key, 7)

    # Parameters with nn.Linear(2,4) / nn.Linear(4,1) shapes.
    w1 = jax.random.uniform(k_w1, (4, 2), minval=-0.7, maxval=0.7, dtype=jnp.float32)
    b1 = jax.random.uniform(k_b1, (4,), minval=-0.7, maxval=0.7, dtype=jnp.float32)
    w2 = jax.random.uniform(k_w2, (1, 4), minval=-0.5, maxval=0.5, dtype=jnp.float32)
    b2 = jax.random.uniform(k_b2, (1,), minval=-0.5, maxval=0.5, dtype=jnp.float32)

    # B=8: single small tile; B=600: lane-padding tail; B=3000: multi-step grid
    # (exercises tiling, sublane padding and the 2-step parallel grid path).
    for B, k in ((8, k1), (600, k2), (3000, k3)):
        x = jax.random.normal(k, (B, 2), dtype=jnp.float32)
        out = mlp_forward(x, w1, b1, w2, b2)
        jax.block_until_ready(out)
        ref = mlp_reference(x, w1, b1, w2, b2)
        assert out.shape == (B, 1)
        assert jnp.allclose(out, ref, atol=1e-4, rtol=1e-4), (
            B, float(jnp.max(jnp.abs(out - ref))))

    print("KERNEL_OK")
</pallas_src>

<mosaic_0001>
module attributes {stable_mosaic.version = 11 : i64} {
  func.func @mlp_kernel(%arg0: i32, %arg1: memref<17xf32, #tpu.memory_space<smem>>, %arg2: memref<2x1x128xf32, #tpu.memory_space<vmem>>, %arg3: memref<1x128xf32, #tpu.memory_space<vmem>>) attributes {dimension_semantics = [#tpu.dimension_semantics<parallel>], iteration_bounds = array<i64: 1>, scalar_prefetch = 1 : i64, scratch_operands = 0 : i64, tpu.core_type = #tpu.core_type<tc>, window_params = [{transform_indices = @transform_0, window_bounds = array<i64: 2, 1, 128>}, {transform_indices = @transform_1, window_bounds = array<i64: 1, 128>}]} {
    %c0 = arith.constant 0 : index
    %c0_0 = arith.constant 0 : index
    %c0_1 = arith.constant 0 : index
    %0 = vector.load %arg2[%c0, %c0_0, %c0_1] : memref<2x1x128xf32, #tpu.memory_space<vmem>>, vector<1x1x128xf32>
    %1 = vector.shape_cast %0 : vector<1x1x128xf32> to vector<1x128xf32>
    %c1 = arith.constant 1 : index
    %c0_2 = arith.constant 0 : index
    %c0_3 = arith.constant 0 : index
    %2 = vector.load %arg2[%c1, %c0_2, %c0_3] : memref<2x1x128xf32, #tpu.memory_space<vmem>>, vector<1x1x128xf32>
    %3 = vector.shape_cast %2 : vector<1x1x128xf32> to vector<1x128xf32>
    %cst = arith.constant 0.000000e+00 : f32
    %4 = vector.broadcast %cst : f32 to vector<1x128xf32>
    %c16 = arith.constant 16 : index
    %5 = memref.load %arg1[%c16] : memref<17xf32, #tpu.memory_space<smem>>
    %6 = vector.broadcast %5 : f32 to vector<1x128xf32>
    %7 = arith.addf %4, %6 : vector<1x128xf32>
    %c0_4 = arith.constant 0 : index
    %8 = memref.load %arg1[%c0_4] : memref<17xf32, #tpu.memory_space<smem>>
    %c1_5 = arith.constant 1 : index
    %9 = memref.load %arg1[%c1_5] : memref<17xf32, #tpu.memory_space<smem>>
    %c8 = arith.constant 8 : index
    %10 = memref.load %arg1[%c8] : memref<17xf32, #tpu.memory_space<smem>>
    %c12 = arith.constant 12 : index
    %11 = memref.load %arg1[%c12] : memref<17xf32, #tpu.memory_space<smem>>
    %12 = vector.broadcast %8 : f32 to vector<1x128xf32>
    %13 = arith.mulf %12, %1 : vector<1x128xf32>
    %14 = vector.broadcast %9 : f32 to vector<1x128xf32>
    %15 = arith.mulf %14, %3 : vector<1x128xf32>
    %16 = arith.addf %13, %15 : vector<1x128xf32>
    %17 = vector.broadcast %10 : f32 to vector<1x128xf32>
    %18 = arith.addf %16, %17 : vector<1x128xf32>
    %cst_6 = arith.constant 0.000000e+00 : f32
    %19 = vector.broadcast %cst_6 : f32 to vector<1x128xf32>
    %20 = arith.maximumf %18, %19 : vector<1x128xf32>
    %21 = vector.broadcast %11 : f32 to vector<1x128xf32>
    %22 = arith.mulf %21, %20 : vector<1x128xf32>
    %23 = arith.addf %7, %22 : vector<1x128xf32>
    %c2 = arith.constant 2 : index
    %24 = memref.load %arg1[%c2] : memref<17xf32, #tpu.memory_space<smem>>
    %c3 = arith.constant 3 : index
    %25 = memref.load %arg1[%c3] : memref<17xf32, #tpu.memory_space<smem>>
    %c9 = arith.constant 9 : index
    %26 = memref.load %arg1[%c9] : memref<17xf32, #tpu.memory_space<smem>>
    %c13 = arith.constant 13 : index
    %27 = memref.load %arg1[%c13] : memref<17xf32, #tpu.memory_space<smem>>
    %28 = vector.broadcast %24 : f32 to vector<1x128xf32>
    %29 = arith.mulf %28, %1 : vector<1x128xf32>
    %30 = vector.broadcast %25 : f32 to vector<1x128xf32>
    %31 = arith.mulf %30, %3 : vector<1x128xf32>
    %32 = arith.addf %29, %31 : vector<1x128xf32>
    %33 = vector.broadcast %26 : f32 to vector<1x128xf32>
    %34 = arith.addf %32, %33 : vector<1x128xf32>
    %cst_7 = arith.constant 0.000000e+00 : f32
    %35 = vector.broadcast %cst_7 : f32 to vector<1x128xf32>
    %36 = arith.maximumf %34, %35 : vector<1x128xf32>
    %37 = vector.broadcast %27 : f32 to vector<1x128xf32>
    %38 = arith.mulf %37, %36 : vector<1x128xf32>
    %39 = arith.addf %23, %38 : vector<1x128xf32>
    %c4 = arith.constant 4 : index
    %40 = memref.load %arg1[%c4] : memref<17xf32, #tpu.memory_space<smem>>
    %c5 = arith.constant 5 : index
    %41 = memref.load %arg1[%c5] : memref<17xf32, #tpu.memory_space<smem>>
    %c10 = arith.constant 10 : index
    %42 = memref.load %arg1[%c10] : memref<17xf32, #tpu.memory_space<smem>>
    %c14 = arith.constant 14 : index
    %43 = memref.load %arg1[%c14] : memref<17xf32, #tpu.memory_space<smem>>
    %44 = vector.broadcast %40 : f32 to vector<1x128xf32>
    %45 = arith.mulf %44, %1 : vector<1x128xf32>
    %46 = vector.broadcast %41 : f32 to vector<1x128xf32>
    %47 = arith.mulf %46, %3 : vector<1x128xf32>
    %48 = arith.addf %45, %47 : vector<1x128xf32>
    %49 = vector.broadcast %42 : f32 to vector<1x128xf32>
    %50 = arith.addf %48, %49 : vector<1x128xf32>
    %cst_8 = arith.constant 0.000000e+00 : f32
    %51 = vector.broadcast %cst_8 : f32 to vector<1x128xf32>
    %52 = arith.maximumf %50, %51 : vector<1x128xf32>
    %53 = vector.broadcast %43 : f32 to vector<1x128xf32>
    %54 = arith.mulf %53, %52 : vector<1x128xf32>
    %55 = arith.addf %39, %54 : vector<1x128xf32>
    %c6 = arith.constant 6 : index
    %56 = memref.load %arg1[%c6] : memref<17xf32, #tpu.memory_space<smem>>
    %c7 = arith.constant 7 : index
    %57 = memref.load %arg1[%c7] : memref<17xf32, #tpu.memory_space<smem>>
    %c11 = arith.constant 11 : index
    %58 = memref.load %arg1[%c11] : memref<17xf32, #tpu.memory_space<smem>>
    %c15 = arith.constant 15 : index
    %59 = memref.load %arg1[%c15] : memref<17xf32, #tpu.memory_space<smem>>
    %60 = vector.broadcast %56 : f32 to vector<1x128xf32>
    %61 = arith.mulf %60, %1 : vector<1x128xf32>
    %62 = vector.broadcast %57 : f32 to vector<1x128xf32>
    %63 = arith.mulf %62, %3 : vector<1x128xf32>
    %64 = arith.addf %61, %63 : vector<1x128xf32>
    %65 = vector.broadcast %58 : f32 to vector<1x128xf32>
    %66 = arith.addf %64, %65 : vector<1x128xf32>
    %cst_9 = arith.constant 0.000000e+00 : f32
    %67 = vector.broadcast %cst_9 : f32 to vector<1x128xf32>
    %68 = arith.maximumf %66, %67 : vector<1x128xf32>
    %69 = vector.broadcast %59 : f32 to vector<1x128xf32>
    %70 = arith.mulf %69, %68 : vector<1x128xf32>
    %71 = arith.addf %55, %70 : vector<1x128xf32>
    %72 = math.tanh %71 : vector<1x128xf32>
    %cst_10 = arith.constant 5.000000e-01 : f32
    %73 = vector.broadcast %cst_10 : f32 to vector<1x128xf32>
    %74 = arith.mulf %73, %72 : vector<1x128xf32>
    %cst_11 = arith.constant 5.000000e-01 : f32
    %75 = vector.broadcast %cst_11 : f32 to vector<1x128xf32>
    %76 = arith.addf %74, %75 : vector<1x128xf32>
    %c0_12 = arith.constant 0 : index
    %c0_13 = arith.constant 0 : index
    %77 = vector.load %arg3[%c0_12, %c0_13] : memref<1x128xf32, #tpu.memory_space<vmem>>, vector<1x128xf32>
    tpu.vector_store %arg3[%c0_12, %c0_13], %76 {strides = array<i32>} : memref<1x128xf32, #tpu.memory_space<vmem>>, vector<1x128xf32>,
    return
  }
  func.func @transform_0(%arg0: i32, %arg1: memref<17xf32, #tpu.memory_space<smem>>) -> (i32, i32, i32) {
    %c0_i32 = arith.constant 0 : i32
    %c0_i32_0 = arith.constant 0 : i32
    %c0_i32_1 = arith.constant 0 : i32
    return %c0_i32, %arg0, %c0_i32_0 : i32, i32, i32
  }
  func.func @transform_1(%arg0: i32, %arg1: memref<17xf32, #tpu.memory_space<smem>>) -> (i32, i32) {
    %c0_i32 = arith.constant 0 : i32
    %c0_i32_0 = arith.constant 0 : i32
    return %arg0, %c0_i32 : i32, i32
  }
}

</mosaic_0001>

<bundles_post_ra>
// kernel: tpu_custom_call.1
= control target key start
LH: loop header
LB: loop body
LE: loop exit
PB: predicated region body
PF: predicated region fallthrough
CT: control target
= control target key end

     0   :  { %s223_s0 = inlined_call_operand.hbm [shape: f32[17], index: 0, kind: input, shape index: {}]   ;;  %s224_s1 = inlined_call_operand.vmem [shape: f32[2,1,128], index: 1, kind: input, shape index: {}]   ;;  %s225_s2 = inlined_call_operand.hbm [shape: f32[1,128], index: 2, kind: output, shape index: {}]  }
   0x1   :  { %s119_s11 = scalar_lea.hbm %s223_s0, 16 }
   0x2   :  { %p120_p0 = scmp.ne.s32.totalorder %s223_s0, %s119_s11  ;;  %p123_p1 = scmp.lt.u32.totalorder %s119_s11, %s223_s0 }
   0x4   :  { %p125_p2 = pnand %p123_p1, %p120_p0 }
   0x6   :  { %128 = shalt.err (!%p125_p2)  }
   0x7   :  { %s155_s16 = smov [#allocation3]  }
   0x8   :  { %8 = dma.hbm_to_smem %s223_s0, 16, %s155_s16, [#allocation2] }
   0x9   :  { %151 = dma.done.wait [#allocation2], 16 }
   0xa   :  { %152 = vsyncadd [#allocation2], 4294967280 }
   0xb   :  { %10 = sfence }
   0xc   :  { %s20_s19 = sld [smem:[#allocation3]]  ;;  %s100_s20 = sld [smem:[#allocation3 + $0x1]] }
   0xd   :  { %11 = vsyncpa [#allocation5], 0  ;;  %s184_s21 = sld [smem:[#allocation3 + $0x10]]  ;;  %s103_s23 = sld [smem:[#allocation3 + $0x2]]  ;;  %v14_v0 = vld [vmem:[%s224_s1] sm:$0x1] }
   0xe   :  { %s101_s22 = sld [smem:[#allocation3 + $0x8]]  ;;  %s104_s24 = sld [smem:[#allocation3 + $0x3]]  ;;  %v98_v1 = vld [vmem:[%s224_s1 + $0x1] sm:$0x1] }
   0xf   :  { %s189_s27 = sld [smem:[#allocation3 + $0xc]]  ;;  %s191_s28 = sld [smem:[#allocation3 + $0x9]] }
  0x10   :  { %s107_s30 = sld [smem:[#allocation3 + $0x4]]  ;;  %s108_s3 = sld [smem:[#allocation3 + $0x5]] }
  0x11   :  { %s196_s4 = sld [smem:[#allocation3 + $0xd]]  ;;  %s198_s5 = sld [smem:[#allocation3 + $0xa]] }
  0x12   :  { %v24_v2 = vstv %s20_s19  ;;  %v26_v3 = vstv %s100_s20  ;;  %s111_s6 = sld [smem:[#allocation3 + $0x6]]  ;;  %s112_s7 = sld [smem:[#allocation3 + $0x7]] }
  0x13   :  { %v25_v4 = vmul.f32 %v24_v2, %v14_v0  ;;  %v27_v5 = vmul.f32 %v98_v1, %v26_v3  ;;  %s200_s8 = sld [smem:[#allocation3 + $0xb]]  ;;  %v39_v7 = vstv %s103_s23  ;;  %s202_s1 = sld [smem:[#allocation3 + $0xe]]  ;;  %v18_v27 = vstv %s184_s21 }
  0x14   :  { %v29_v6 = vstv %s101_s22  ;;  %v41_v8 = vstv %s104_s24  ;;  %v40_v10 = vmul.f32 %v39_v7, %v14_v0  ;;  %s114_s9 = sld [smem:[#allocation3 + $0xf]]  ;;  %s156_s10 = smov [#allocation4]  }
  0x15   :  { %v28_v9 = vadd.f32 %v27_v5, %v25_v4  ;;  %v42_v11 = vmul.f32 %v98_v1, %v41_v8  ;;  %v44_v12 = vstv %s191_s28  ;;  %v32_v19 = vstv %s189_s27  ;;  %s90_s11 = sshll.u32 %s156_s10, 4  ;;  %s91_s11 = int_to_ptr.vmem [resolvable:$true] %s90_s11 }
  0x16   :  { %v54_v13 = vstv %s107_s30  ;;  %v56_v14 = vstv %s108_s3  ;;  %s129_s12 = scalar_lea.vmem %s91_s11, 16  ;;  %s133_s13 = scalar_lea.vmem %s91_s11, 32 }
  0x17   :  { %v30_v15 = vadd.f32 %v29_v6, %v28_v9  ;;  %v43_v16 = vadd.f32 %v42_v11, %v40_v10  ;;  %v55_v17 = vmul.f32 %v54_v13, %v14_v0  ;;  %v57_v18 = vmul.f32 %v98_v1, %v56_v14  ;;  %p130_p3 = scmp.ne.s32.totalorder %s91_s11, %s129_s12  ;;  %p134_p4 = scmp.lt.s32.totalorder %s91_s11, %s91_s11 }
  0x18   :  { %v59_v20 = vstv %s198_s5  ;;  %v69_v21 = vstv %s111_s6  ;;  %v71_v22 = vstv %s112_s7  ;;  %v47_v28 = vstv %s196_s4  ;;  %p135_p5 = scmp.lt.s32.totalorder %s133_s13, %s129_s12 }
  0x19   :  { %v31_v23 = vmax.f32 %v30_v15, 0.0  ;;  %v45_v24 = vadd.f32 %v44_v12, %v43_v16  ;;  %v58_v25 = vadd.f32 %v57_v18, %v55_v17  ;;  %v70_v26 = vmul.f32 %v69_v21, %v14_v0 }
  0x1a   :  { %v72_v29 = vmul.f32 %v98_v1, %v71_v22  ;;  %v74_v33 = vstv %s200_s8  ;;  %v62_v34 = vstv %s202_s1  ;;  %v77_v42 = vstv %s114_s9  ;;  %p136_p6 = por %p135_p5, %p134_p4 }
  0x1b   :  { %v33_v30 = vmul.f32 %v32_v19, %v31_v23  ;;  %v46_v31 = vmax.f32 %v45_v24, 0.0  ;;  %v60_v32 = vadd.f32 %v59_v20, %v58_v25 }
  0x1c   :  { %v73_v35 = vadd.f32 %v72_v29, %v70_v26  ;;  %p137_p7 = pnand %p136_p6, %p130_p3 }
  0x1d   :  { %v34_v36 = vadd.f32 %v33_v30, %v18_v27  ;;  %v48_v37 = vmul.f32 %v47_v28, %v46_v31  ;;  %v61_v38 = vmax.f32 %v60_v32, 0.0 }
  0x1e   :  { %v75_v39 = vadd.f32 %v74_v33, %v73_v35 }
  0x1f   :  { %v49_v40 = vadd.f32 %v48_v37, %v34_v36  ;;  %v63_v41 = vmul.f32 %v62_v34, %v61_v38 }
  0x20   :  { %v76_v43 = vmax.f32 %v75_v39, 0.0 }
  0x21   :  { %v64_v44 = vadd.f32 %v63_v41, %v49_v40 }
  0x22   :  { %v78_v45 = vmul.f32 %v77_v42, %v76_v43 }
  0x24   :  { %v79_v46 = vadd.f32 %v78_v45, %v64_v44 }
  0x26   :  { %117 = vtanh.f32 %v79_v46 }
  0x30   :  { %v118_v47 = vpop.eup %117 }
  0x31   :  { %v81_v48 = vmul.f32 0.5, %v118_v47 }
  0x33   :  { %v82_v49 = vadd.f32 0.5, %v81_v48 }
  0x35   :  { %83 = vst [vmem:[#allocation4] sm:$0x1] %v82_v49 }
  0x36   :  { %140 = shalt.err (!%p137_p7)
}
  0x37   :  { %s141_s16 = scalar_lea.hbm %s225_s2, 16 }
  0x38   :  { %p142_p8 = scmp.ne.s32.totalorder %s225_s2, %s141_s16  ;;  %p145_p9 = scmp.lt.u32.totalorder %s141_s16, %s225_s2 }
  0x3a   :  { %p147_p10 = pnand %p145_p9, %p142_p8 }
  0x3c   :  { %150 = shalt.err (!%p147_p10)
}
  0x3d   :  { %93 = dma.vmem_to_hbm [thread:$0]  %s91_s11, 16, %s225_s2, [#allocation5]  }
  0x3e   :  { %153 = dma.done.wait [#allocation5], 16  }
  0x3f   :  { %154 = vsyncadd [#allocation5], 4294967280 }
  0x40   :  { %97 = vsyncpa [#allocation5], 1 }

</bundles_post_ra>
